<compile_context>
chip_gen: v6e
topology: v6e:2x2x1
jax: 0.10.0
libtpu: 0.0.40
codegen_flags: <defaults>
</compile_context>

<pallas_src>
import functools

import jax
import jax.numpy as jnp
from jax import lax
from jax.experimental import pallas as pl
from jax.experimental.pallas import tpu as pltpu

_LANE = 128
_F32_SUBLANE = 8


def _round_up(x, m):
    return ((x + m - 1) // m) * m


def _sublane_for(dtype):
    itemsize = jnp.dtype(dtype).itemsize
    return {4: 8, 2: 16, 1: 32}.get(itemsize, 8)


def _batch_tiling(n_rows, block_rows, sub):
    """Sublane-aligned batch tiling with bounded padding (< sub rows per tile)."""
    n_aligned = _round_up(max(n_rows, 1), sub)
    n_tiles = max(1, pl.cdiv(n_aligned, block_rows))
    tm = _round_up(pl.cdiv(n_aligned, n_tiles), sub)
    return tm, n_tiles, n_tiles * tm


# ----------------------------- fused kernel --------------------------------
def _fused_kernel(x_ref, w1t_ref, w2t_ref, gamma_ref, beta_ref, o_ref,
                  h_cache, sum_ref, sumsq_ref, scale_ref, shift_ref,
                  *, inv_n, eps):
    phase = pl.program_id(0)   # 0: stats + cache h, 1: BN + ReLU + second matmul
    t = pl.program_id(1)       # batch tile

    @pl.when(jnp.logical_and(phase == 0, t == 0))
    def _init():
        sum_ref[...] = jnp.zeros_like(sum_ref)
        sumsq_ref[...] = jnp.zeros_like(sumsq_ref)

    @pl.when(phase == 0)
    def _stats_phase():
        # Native-dtype operands, f32 accumulation on the MXU.
        h = jnp.dot(x_ref[...], w1t_ref[...], preferred_element_type=jnp.float32)
        h_cache[t] = h
        # Batch (sublane-axis) reduction on the MXU via a ones matmul (XLU stays free).
        ones = jnp.ones((_F32_SUBLANE, h.shape[0]), dtype=jnp.float32)
        sum_ref[...] += jnp.dot(ones, h, preferred_element_type=jnp.float32)
        sumsq_ref[...] += jnp.dot(ones, h * h, preferred_element_type=jnp.float32)

    @pl.when(jnp.logical_and(phase == 1, t == 0))
    def _fold_bn():
        mean = sum_ref[0:1, :] * inv_n
        var = jnp.maximum(sumsq_ref[0:1, :] * inv_n - mean * mean, 0.0)
        sc = gamma_ref[...] * lax.rsqrt(var + eps)
        scale_ref[...] = sc
        shift_ref[...] = beta_ref[...] - mean * sc

    @pl.when(phase == 1)
    def _emit_phase():
        h = jnp.maximum(h_cache[t] * scale_ref[...] + shift_ref[...], 0.0)
        y = jnp.dot(h.astype(w2t_ref.dtype), w2t_ref[...],
                    preferred_element_type=jnp.float32)
        o_ref[...] = y.astype(o_ref.dtype)


# --------------------------- two-pass fallback ------------------------------
def _stats_kernel(x_ref, w1t_ref, sum_ref, sumsq_ref):
    """Pass 1: accumulate per-feature sum(h) and sum(h*h) across the batch grid."""
    @pl.when(pl.program_id(0) == 0)
    def _init():
        sum_ref[...] = jnp.zeros_like(sum_ref)
        sumsq_ref[...] = jnp.zeros_like(sumsq_ref)

    h = jnp.dot(x_ref[...], w1t_ref[...], preferred_element_type=jnp.float32)
    ones = jnp.ones((_F32_SUBLANE, h.shape[0]), dtype=jnp.float32)
    sum_ref[...] += jnp.dot(ones, h, preferred_element_type=jnp.float32)
    sumsq_ref[...] += jnp.dot(ones, h * h, preferred_element_type=jnp.float32)


def _fwd_kernel(x_ref, w1ts_ref, w2t_ref, shift_ref, o_ref):
    """Pass 2: y = relu(x @ (W1*scale) + shift) @ W2^T (BN scale folded into W1)."""
    h = jnp.dot(x_ref[...], w1ts_ref[...], preferred_element_type=jnp.float32)
    h = jnp.maximum(h + shift_ref[...], 0.0)
    y = jnp.dot(h.astype(w2t_ref.dtype), w2t_ref[...],
                preferred_element_type=jnp.float32)
    o_ref[...] = y.astype(o_ref.dtype)


# ------------------------------- wrapper ------------------------------------
def mlp_forward(x, w1, w2, gamma, beta, *, eps=1e-5, block_rows=512, mode="auto"):
    """x: [N, d_in]; w1: [H, d_in]; w2: [d_out, H]; gamma/beta: [H] (PyTorch layouts).

    mode: "auto" (pick by VMEM budget), "fused", or "two_pass".
    """
    N, d_in = x.shape
    H = w1.shape[0]
    d_out = w2.shape[0]
    f32 = jnp.float32
    x_bytes = jnp.dtype(x.dtype).itemsize
    w_bytes = jnp.dtype(w1.dtype).itemsize

    # Batch tiling with bounded padding; padded rows are zero (add 0 to BN sums).
    sub = _sublane_for(x.dtype)
    block_rows = max(_round_up(block_rows, sub), sub)
    tm, n_i, Np = _batch_tiling(N, block_rows, sub)
    xp = jnp.pad(x, ((0, Np - N), (0, 0)))

    # Lane-dense feature padding (zeros): padded hidden features produce h == 0,
    # scale/shift == 0 and zero W2 rows, so they contribute nothing.
    Hp = _round_up(H, _LANE)
    Dp = _round_up(d_out, _LANE)
    w1t = jnp.zeros((d_in, Hp), w1.dtype).at[:, :H].set(w1.T)           # [d_in, Hp]
    gamma_p = jnp.zeros((1, Hp), f32).at[0, :H].set(gamma.astype(f32))
    beta_p = jnp.zeros((1, Hp), f32).at[0, :H].set(beta.astype(f32))

    invariant = pl.Buffered(1)   # single-buffer grid-invariant operands

    # VMEM footprint of the fused (h cached in VMEM) variant.
    fused_bytes = (
        Np * Hp * 4                         # h cache (f32)
        + d_in * Hp * w_bytes               # w1t (single-buffered)
        + Hp * Dp * w_bytes                 # w2t (single-buffered)
        + 2 * tm * d_in * x_bytes           # x tile (double-buffered)
        + 2 * tm * Dp * x_bytes             # out tile (double-buffered)
        + (2 * _F32_SUBLANE + 4) * Hp * 4   # stats + scale/shift + gamma/beta
    )
    _FUSED_VMEM_BUDGET = 40 << 20           # headroom on v7x (64 MiB physical VMEM)
    use_fused = fused_bytes <= _FUSED_VMEM_BUDGET if mode == "auto" else mode == "fused"

    if use_fused:
        w2t = jnp.zeros((Hp, Dp), w2.dtype).at[:H, :d_out].set(w2.T)    # [Hp, Dp]
        vmem_limit = int(min(max(2 * fused_bytes, 8 << 20), 64 << 20))
        kernel = functools.partial(_fused_kernel, inv_n=1.0 / N, eps=float(eps))
        y_p = pl.pallas_call(
            kernel,
            out_shape=jax.ShapeDtypeStruct((Np, Dp), x.dtype),
            grid_spec=pltpu.PrefetchScalarGridSpec(
                num_scalar_prefetch=0,
                grid=(2, n_i),
                in_specs=[
                    # x: batch tile t in phase 0; pinned to block 0 in phase 1 (no re-fetch).
                    pl.BlockSpec((tm, d_in), lambda p, t: (t * (1 - p), 0)),
                    pl.BlockSpec((d_in, Hp), lambda p, t: (0, 0), pipeline_mode=invariant),
                    pl.BlockSpec((Hp, Dp), lambda p, t: (0, 0), pipeline_mode=invariant),
                    pl.BlockSpec((1, Hp), lambda p, t: (0, 0), pipeline_mode=invariant),
                    pl.BlockSpec((1, Hp), lambda p, t: (0, 0), pipeline_mode=invariant),
                ],
                # output: resident (block 0) during phase 0, written per tile in phase 1.
                out_specs=pl.BlockSpec((tm, Dp), lambda p, t: (t * p, 0)),
                scratch_shapes=[
                    pltpu.VMEM((n_i, tm, Hp), f32),          # h cache (f32 keeps exactness)
                    pltpu.VMEM((_F32_SUBLANE, Hp), f32),     # sum(h)
                    pltpu.VMEM((_F32_SUBLANE, Hp), f32),     # sum(h*h)
                    pltpu.VMEM((1, Hp), f32),                # scale
                    pltpu.VMEM((1, Hp), f32),                # shift
                ]),
            compiler_params=pltpu.CompilerParams(
                dimension_semantics=("arbitrary", "arbitrary"),
                vmem_limit_bytes=vmem_limit),
        )(xp, w1t, w2t, gamma_p, beta_p)
        return y_p[:N, :d_out]

    # ---------------- two-pass fallback (h does not fit VMEM) ----------------
    # Pass 1: per-feature sum(h), sum(h^2) with f32 accumulation.
    p1_bytes = (2 * tm * d_in * x_bytes + d_in * Hp * w_bytes
                + 4 * _F32_SUBLANE * Hp * 4)
    sum_h, sum_h2 = pl.pallas_call(
        _stats_kernel,
        out_shape=(jax.ShapeDtypeStruct((_F32_SUBLANE, Hp), f32),
                   jax.ShapeDtypeStruct((_F32_SUBLANE, Hp), f32)),
        grid_spec=pltpu.PrefetchScalarGridSpec(
            num_scalar_prefetch=0,
            grid=(n_i,),
            in_specs=[
                pl.BlockSpec((tm, d_in), lambda i: (i, 0)),
                pl.BlockSpec((d_in, Hp), lambda i: (0, 0), pipeline_mode=invariant),
            ],
            out_specs=(
                pl.BlockSpec((_F32_SUBLANE, Hp), lambda i: (0, 0)),
                pl.BlockSpec((_F32_SUBLANE, Hp), lambda i: (0, 0)),
            )),
        compiler_params=pltpu.CompilerParams(
            dimension_semantics=("arbitrary",),
            vmem_limit_bytes=int(min(max(2 * p1_bytes, 8 << 20), 64 << 20))),
    )(xp, w1t)

    # Fold training-mode BatchNorm (batch mean, biased variance, matches PyTorch
    # BN1d forward) into per-feature scale/shift, then fold scale into W1 (f32
    # math before any narrow cast).
    inv_n = jnp.float32(1.0 / N)
    mean = sum_h[0:1, :] * inv_n
    var = jnp.maximum(sum_h2[0:1, :] * inv_n - mean * mean, 0.0)
    scale = gamma_p * lax.rsqrt(var + eps)
    shift = beta_p - mean * scale
    w1t_scaled = (w1t.astype(f32) * scale).astype(w1.dtype)

    # Pass 2: y = relu(x @ W1s + shift) @ W2^T, tiled over batch and output features.
    max_tn = 512
    n_j = max(1, pl.cdiv(Dp, max_tn))
    tn = _round_up(pl.cdiv(Dp, n_j), _LANE)
    Dp2 = n_j * tn
    w2t = jnp.zeros((Hp, Dp2), w2.dtype).at[:H, :d_out].set(w2.T)       # [Hp, Dp2]
    w2_mode = invariant if n_j == 1 else None
    p2_bytes = (2 * tm * d_in * x_bytes + d_in * Hp * w_bytes
                + (1 if n_j == 1 else 2) * Hp * tn * w_bytes
                + Hp * 4 + 2 * tm * tn * x_bytes)
    y_p = pl.pallas_call(
        _fwd_kernel,
        out_shape=jax.ShapeDtypeStruct((Np, Dp2), x.dtype),
        grid_spec=pltpu.PrefetchScalarGridSpec(
            num_scalar_prefetch=0,
            grid=(n_i, n_j),
            in_specs=[
                pl.BlockSpec((tm, d_in), lambda i, j: (i, 0)),
                pl.BlockSpec((d_in, Hp), lambda i, j: (0, 0), pipeline_mode=invariant),
                pl.BlockSpec((Hp, tn), lambda i, j: (0, j), pipeline_mode=w2_mode),
                pl.BlockSpec((1, Hp), lambda i, j: (0, 0), pipeline_mode=invariant),
            ],
            out_specs=pl.BlockSpec((tm, tn), lambda i, j: (i, j))),
        compiler_params=pltpu.CompilerParams(
            dimension_semantics=("parallel", "parallel"),
            vmem_limit_bytes=int(min(max(2 * p2_bytes, 8 << 20), 64 << 20))),
    )(xp, w1t_scaled, w2t, shift)
    return y_p[:N, :d_out]


def mlp_reference(x, w1, w2, gamma, beta, eps=1e-5):
    h = x @ w1.T
    mean = h.mean(axis=0, keepdims=True)
    var = ((h - mean) ** 2).mean(axis=0, keepdims=True)  # biased, like PyTorch BN fwd
    h = (h - mean) / jnp.sqrt(var + eps) * gamma + beta
    h = jnp.maximum(h, 0.0)
    return h @ w2.T


if __name__ == "__main__":
    # Small shapes consistent with the module. N=21 exercises batch-row padding;
    # block_rows=8 exercises the multi-tile grid + cross-tile BN-stat accumulation.
    N, input_dim, hidden_dim, output_dim = 21, 16, 32, 16

    key = jax.random.PRNGKey(0)
    kx, k1, k2, kg, kb = jax.random.split(key, 5)

    x = jax.random.normal(kx, (N, input_dim), dtype=jnp.float32)
    bound1 = 1.0 / (input_dim ** 0.5)
    bound2 = 1.0 / (hidden_dim ** 0.5)
    w1 = jax.random.uniform(k1, (hidden_dim, input_dim), jnp.float32,
                            minval=-bound1, maxval=bound1)
    w2 = jax.random.uniform(k2, (output_dim, hidden_dim), jnp.float32,
                            minval=-bound2, maxval=bound2)
    # Non-trivial BN parameters (learnable in the PyTorch module) to exercise scale/shift.
    gamma = 1.0 + 0.1 * jax.random.normal(kg, (hidden_dim,), jnp.float32)
    beta = 0.1 * jax.random.normal(kb, (hidden_dim,), jnp.float32)

    y_ref = mlp_reference(x, w1, w2, gamma, beta)

    # Fused path (h cached in VMEM), multi-tile batch grid.
    y_fused = mlp_forward(x, w1, w2, gamma, beta, block_rows=8, mode="fused")
    # Two-pass fallback (BN scale folded into W1), same tiling.
    y_two = mlp_forward(x, w1, w2, gamma, beta, block_rows=8, mode="two_pass")
    # Default auto path (single batch tile, fused).
    y_auto = mlp_forward(x, w1, w2, gamma, beta)
    jax.block_until_ready((y_fused, y_two, y_auto))

    for name, y in (("fused", y_fused), ("two_pass", y_two), ("auto", y_auto)):
        assert y.shape == (N, output_dim), (name, y.shape)
        assert jnp.allclose(y, y_ref, atol=1e-4, rtol=1e-4), f"{name} mismatch vs reference"

    print("KERNEL_OK")
</pallas_src>

<mosaic_0001>
module attributes {stable_mosaic.version = 11 : i64} {
  func.func @_fused_kernel(%arg0: i32, %arg1: i32, %arg2: memref<8x16xf32, #tpu.memory_space<vmem>>, %arg3: memref<16x128xf32, #tpu.memory_space<vmem>>, %arg4: memref<128x128xf32, #tpu.memory_space<vmem>>, %arg5: memref<1x128xf32, #tpu.memory_space<vmem>>, %arg6: memref<1x128xf32, #tpu.memory_space<vmem>>, %arg7: memref<8x128xf32, #tpu.memory_space<vmem>>, %arg8: memref<3x8x128xf32, #tpu.memory_space<vmem>>, %arg9: memref<8x128xf32, #tpu.memory_space<vmem>>, %arg10: memref<8x128xf32, #tpu.memory_space<vmem>>, %arg11: memref<1x128xf32, #tpu.memory_space<vmem>>, %arg12: memref<1x128xf32, #tpu.memory_space<vmem>>) attributes {dimension_semantics = [#tpu.dimension_semantics<arbitrary>, #tpu.dimension_semantics<arbitrary>], iteration_bounds = array<i64: 2, 3>, scalar_prefetch = 0 : i64, scratch_operands = 5 : i64, tpu.core_type = #tpu.core_type<tc>, window_params = [{transform_indices = @transform_0, window_bounds = array<i64: 8, 16>}, {pipeline_mode = #tpu.pipeline_mode<synchronous>, transform_indices = @transform_1, window_bounds = array<i64: 16, 128>}, {pipeline_mode = #tpu.pipeline_mode<synchronous>, transform_indices = @transform_2, window_bounds = array<i64: 128, 128>}, {pipeline_mode = #tpu.pipeline_mode<synchronous>, transform_indices = @transform_3, window_bounds = array<i64: 1, 128>}, {pipeline_mode = #tpu.pipeline_mode<synchronous>, transform_indices = @transform_4, window_bounds = array<i64: 1, 128>}, {transform_indices = @transform_5, window_bounds = array<i64: 8, 128>}]} {
    %c0_i32 = arith.constant 0 : i32
    %0 = arith.cmpi eq, %arg0, %c0_i32 : i32
    %c0_i32_0 = arith.constant 0 : i32
    %1 = arith.cmpi eq, %arg1, %c0_i32_0 : i32
    %2 = arith.andi %0, %1 : i1
    %3 = arith.extui %2 : i1 to i32
    %c0_i32_1 = arith.constant 0 : i32
    %4 = arith.cmpi ne, %3, %c0_i32_1 : i32
    scf.if %4 {
      %cst = arith.constant 0.000000e+00 : f32
      %16 = vector.broadcast %cst : f32 to vector<8x128xf32>
      %c0 = arith.constant 0 : index
      %c0_8 = arith.constant 0 : index
      %17 = vector.load %arg9[%c0, %c0_8] : memref<8x128xf32, #tpu.memory_space<vmem>>, vector<8x128xf32>
      tpu.vector_store %arg9[%c0, %c0_8], %16 {strides = array<i32>} : memref<8x128xf32, #tpu.memory_space<vmem>>, vector<8x128xf32>,
      %cst_9 = arith.constant 0.000000e+00 : f32
      %18 = vector.broadcast %cst_9 : f32 to vector<8x128xf32>
      %c0_10 = arith.constant 0 : index
      %c0_11 = arith.constant 0 : index
      %19 = vector.load %arg10[%c0_10, %c0_11] : memref<8x128xf32, #tpu.memory_space<vmem>>, vector<8x128xf32>
      tpu.vector_store %arg10[%c0_10, %c0_11], %18 {strides = array<i32>} : memref<8x128xf32, #tpu.memory_space<vmem>>, vector<8x128xf32>,
    } else {
    }
    %c0_i32_2 = arith.constant 0 : i32
    %5 = arith.cmpi eq, %arg0, %c0_i32_2 : i32
    %6 = arith.extui %5 : i1 to i32
    %c0_i32_3 = arith.constant 0 : i32
    %7 = arith.cmpi ne, %6, %c0_i32_3 : i32
    scf.if %7 {
      %c0 = arith.constant 0 : index
      %c0_8 = arith.constant 0 : index
      %16 = vector.load %arg2[%c0, %c0_8] : memref<8x16xf32, #tpu.memory_space<vmem>>, vector<8x16xf32>
      %c0_9 = arith.constant 0 : index
      %c0_10 = arith.constant 0 : index
      %17 = vector.load %arg3[%c0_9, %c0_10] : memref<16x128xf32, #tpu.memory_space<vmem>>, vector<16x128xf32>
      %cst = arith.constant dense<0.000000e+00> : vector<8x128xf32>
      %18 = tpu.matmul %16, %17, %cst {dimension_numbers = #tpu.dot_dimension_numbers<[1], [0], [0], [1], [0, 0, 1, 1], [], []>} : vector<8x16xf32>, vector<16x128xf32>, vector<8x128xf32> -> vector<8x128xf32>
      %19 = arith.index_cast %arg1 : i32 to index
      %c0_11 = arith.constant 0 : index
      %c0_12 = arith.constant 0 : index
      %20 = vector.load %arg8[%19, %c0_11, %c0_12] : memref<3x8x128xf32, #tpu.memory_space<vmem>>, vector<1x8x128xf32>
      %21 = vector.shape_cast %20 : vector<1x8x128xf32> to vector<8x128xf32>
      %22 = vector.shape_cast %18 : vector<8x128xf32> to vector<1x8x128xf32>
      tpu.vector_store %arg8[%19, %c0_11, %c0_12], %22 {strides = array<i32>} : memref<3x8x128xf32, #tpu.memory_space<vmem>>, vector<1x8x128xf32>,
      %cst_13 = arith.constant 1.000000e+00 : f32
      %23 = vector.broadcast %cst_13 : f32 to vector<8x8xf32>
      %c0_14 = arith.constant 0 : index
      %c0_15 = arith.constant 0 : index
      %24 = vector.load %arg9[%c0_14, %c0_15] : memref<8x128xf32, #tpu.memory_space<vmem>>, vector<8x128xf32>
      %cst_16 = arith.constant dense<0.000000e+00> : vector<8x128xf32>
      %25 = tpu.matmul %23, %18, %cst_16 {dimension_numbers = #tpu.dot_dimension_numbers<[1], [0], [0], [1], [0, 0, 1, 1], [], []>} : vector<8x8xf32>, vector<8x128xf32>, vector<8x128xf32> -> vector<8x128xf32>
      %26 = arith.addf %24, %25 : vector<8x128xf32>
      %c0_17 = arith.constant 0 : index
      %c0_18 = arith.constant 0 : index
      %27 = vector.load %arg9[%c0_17, %c0_18] : memref<8x128xf32, #tpu.memory_space<vmem>>, vector<8x128xf32>
      tpu.vector_store %arg9[%c0_17, %c0_18], %26 {strides = array<i32>} : memref<8x128xf32, #tpu.memory_space<vmem>>, vector<8x128xf32>,
      %c0_19 = arith.constant 0 : index
      %c0_20 = arith.constant 0 : index
      %28 = vector.load %arg10[%c0_19, %c0_20] : memref<8x128xf32, #tpu.memory_space<vmem>>, vector<8x128xf32>
      %29 = arith.mulf %18, %18 : vector<8x128xf32>
      %cst_21 = arith.constant dense<0.000000e+00> : vector<8x128xf32>
      %30 = tpu.matmul %23, %29, %cst_21 {dimension_numbers = #tpu.dot_dimension_numbers<[1], [0], [0], [1], [0, 0, 1, 1], [], []>} : vector<8x8xf32>, vector<8x128xf32>, vector<8x128xf32> -> vector<8x128xf32>
      %31 = arith.addf %28, %30 : vector<8x128xf32>
      %c0_22 = arith.constant 0 : index
      %c0_23 = arith.constant 0 : index
      %32 = vector.load %arg10[%c0_22, %c0_23] : memref<8x128xf32, #tpu.memory_space<vmem>>, vector<8x128xf32>
      tpu.vector_store %arg10[%c0_22, %c0_23], %31 {strides = array<i32>} : memref<8x128xf32, #tpu.memory_space<vmem>>, vector<8x128xf32>,
    } else {
    }
    %c1_i32 = arith.constant 1 : i32
    %8 = arith.cmpi eq, %arg0, %c1_i32 : i32
    %c0_i32_4 = arith.constant 0 : i32
    %9 = arith.cmpi eq, %arg1, %c0_i32_4 : i32
    %10 = arith.andi %8, %9 : i1
    %11 = arith.extui %10 : i1 to i32
    %c0_i32_5 = arith.constant 0 : i32
    %12 = arith.cmpi ne, %11, %c0_i32_5 : i32
    scf.if %12 {
      %c0 = arith.constant 0 : index
      %c0_8 = arith.constant 0 : index
      %16 = vector.load %arg9[%c0, %c0_8] : memref<8x128xf32, #tpu.memory_space<vmem>>, vector<1x128xf32>
      %cst = arith.constant 0.0476190485 : f32
      %17 = vector.broadcast %cst : f32 to vector<1x128xf32>
      %18 = arith.mulf %16, %17 : vector<1x128xf32>
      %c0_9 = arith.constant 0 : index
      %c0_10 = arith.constant 0 : index
      %19 = vector.load %arg10[%c0_9, %c0_10] : memref<8x128xf32, #tpu.memory_space<vmem>>, vector<1x128xf32>
      %cst_11 = arith.constant 0.0476190485 : f32
      %20 = vector.broadcast %cst_11 : f32 to vector<1x128xf32>
      %21 = arith.mulf %19, %20 : vector<1x128xf32>
      %22 = arith.mulf %18, %18 : vector<1x128xf32>
      %23 = arith.subf %21, %22 : vector<1x128xf32>
      %cst_12 = arith.constant 0.000000e+00 : f32
      %24 = vector.broadcast %cst_12 : f32 to vector<1x128xf32>
      %25 = arith.maximumf %23, %24 : vector<1x128xf32>
      %c0_13 = arith.constant 0 : index
      %c0_14 = arith.constant 0 : index
      %26 = vector.load %arg5[%c0_13, %c0_14] : memref<1x128xf32, #tpu.memory_space<vmem>>, vector<1x128xf32>
      %cst_15 = arith.constant 9.99999974E-6 : f32
      %27 = vector.broadcast %cst_15 : f32 to vector<1x128xf32>
      %28 = arith.addf %25, %27 : vector<1x128xf32>
      %29 = math.rsqrt %28 : vector<1x128xf32>
      %30 = arith.mulf %26, %29 : vector<1x128xf32>
      %c0_16 = arith.constant 0 : index
      %c0_17 = arith.constant 0 : index
      %31 = vector.load %arg11[%c0_16, %c0_17] : memref<1x128xf32, #tpu.memory_space<vmem>>, vector<1x128xf32>
      tpu.vector_store %arg11[%c0_16, %c0_17], %30 {strides = array<i32>} : memref<1x128xf32, #tpu.memory_space<vmem>>, vector<1x128xf32>,
      %c0_18 = arith.constant 0 : index
      %c0_19 = arith.constant 0 : index
      %32 = vector.load %arg6[%c0_18, %c0_19] : memref<1x128xf32, #tpu.memory_space<vmem>>, vector<1x128xf32>
      %33 = arith.mulf %18, %30 : vector<1x128xf32>
      %34 = arith.subf %32, %33 : vector<1x128xf32>
      %c0_20 = arith.constant 0 : index
      %c0_21 = arith.constant 0 : index
      %35 = vector.load %arg12[%c0_20, %c0_21] : memref<1x128xf32, #tpu.memory_space<vmem>>, vector<1x128xf32>
      tpu.vector_store %arg12[%c0_20, %c0_21], %34 {strides = array<i32>} : memref<1x128xf32, #tpu.memory_space<vmem>>, vector<1x128xf32>,
    } else {
    }
    %c1_i32_6 = arith.constant 1 : i32
    %13 = arith.cmpi eq, %arg0, %c1_i32_6 : i32
    %14 = arith.extui %13 : i1 to i32
    %c0_i32_7 = arith.constant 0 : i32
    %15 = arith.cmpi ne, %14, %c0_i32_7 : i32
    scf.if %15 {
      %16 = arith.index_cast %arg1 : i32 to index
      %c0 = arith.constant 0 : index
      %c0_8 = arith.constant 0 : index
      %17 = vector.load %arg8[%16, %c0, %c0_8] : memref<3x8x128xf32, #tpu.memory_space<vmem>>, vector<1x8x128xf32>
      %18 = vector.shape_cast %17 : vector<1x8x128xf32> to vector<8x128xf32>
      %c0_9 = arith.constant 0 : index
      %c0_10 = arith.constant 0 : index
      %19 = vector.load %arg11[%c0_9, %c0_10] : memref<1x128xf32, #tpu.memory_space<vmem>>, vector<1x128xf32>
      %20 = vector.broadcast %19 : vector<1x128xf32> to vector<8x128xf32>
      %21 = arith.mulf %18, %20 : vector<8x128xf32>
      %c0_11 = arith.constant 0 : index
      %c0_12 = arith.constant 0 : index
      %22 = vector.load %arg12[%c0_11, %c0_12] : memref<1x128xf32, #tpu.memory_space<vmem>>, vector<1x128xf32>
      %23 = vector.broadcast %22 : vector<1x128xf32> to vector<8x128xf32>
      %24 = arith.addf %21, %23 : vector<8x128xf32>
      %cst = arith.constant 0.000000e+00 : f32
      %25 = vector.broadcast %cst : f32 to vector<8x128xf32>
      %26 = arith.maximumf %24, %25 : vector<8x128xf32>
      %c0_13 = arith.constant 0 : index
      %c0_14 = arith.constant 0 : index
      %27 = vector.load %arg4[%c0_13, %c0_14] : memref<128x128xf32, #tpu.memory_space<vmem>>, vector<128x128xf32>
      %cst_15 = arith.constant dense<0.000000e+00> : vector<8x128xf32>
      %28 = tpu.matmul %26, %27, %cst_15 {dimension_numbers = #tpu.dot_dimension_numbers<[1], [0], [0], [1], [0, 0, 1, 1], [], []>} : vector<8x128xf32>, vector<128x128xf32>, vector<8x128xf32> -> vector<8x128xf32>
      %c0_16 = arith.constant 0 : index
      %c0_17 = arith.constant 0 : index
      %29 = vector.load %arg7[%c0_16, %c0_17] : memref<8x128xf32, #tpu.memory_space<vmem>>, vector<8x128xf32>
      tpu.vector_store %arg7[%c0_16, %c0_17], %28 {strides = array<i32>} : memref<8x128xf32, #tpu.memory_space<vmem>>, vector<8x128xf32>,
    } else {
    }
    return
  }
  func.func @transform_0(%arg0: i32, %arg1: i32) -> (i32, i32) {
    %c1_i32 = arith.constant 1 : i32
    %0 = arith.subi %c1_i32, %arg0 : i32
    %1 = arith.muli %arg1, %0 : i32
    %c0_i32 = arith.constant 0 : i32
    %c0_i32_0 = arith.constant 0 : i32
    return %1, %c0_i32 : i32, i32
  }
  func.func @transform_1(%arg0: i32, %arg1: i32) -> (i32, i32) {
    %c0_i32 = arith.constant 0 : i32
    %c0_i32_0 = arith.constant 0 : i32
    %c0_i32_1 = arith.constant 0 : i32
    return %c0_i32, %c0_i32_0 : i32, i32
  }
  func.func @transform_2(%arg0: i32, %arg1: i32) -> (i32, i32) {
    %c0_i32 = arith.constant 0 : i32
    %c0_i32_0 = arith.constant 0 : i32
    %c0_i32_1 = arith.constant 0 : i32
    return %c0_i32, %c0_i32_0 : i32, i32
  }
  func.func @transform_3(%arg0: i32, %arg1: i32) -> (i32, i32) {
    %c0_i32 = arith.constant 0 : i32
    %c0_i32_0 = arith.constant 0 : i32
    %c0_i32_1 = arith.constant 0 : i32
    return %c0_i32, %c0_i32_0 : i32, i32
  }
  func.func @transform_4(%arg0: i32, %arg1: i32) -> (i32, i32) {
    %c0_i32 = arith.constant 0 : i32
    %c0_i32_0 = arith.constant 0 : i32
    %c0_i32_1 = arith.constant 0 : i32
    return %c0_i32, %c0_i32_0 : i32, i32
  }
  func.func @transform_5(%arg0: i32, %arg1: i32) -> (i32, i32) {
    %0 = arith.muli %arg1, %arg0 : i32
    %c0_i32 = arith.constant 0 : i32
    %c0_i32_0 = arith.constant 0 : i32
    return %0, %c0_i32 : i32, i32
  }
}

</mosaic_0001>

<bundles_post_ra>
// kernel: tpu_custom_call.1
= control target key start
LH: loop header
LB: loop body
LE: loop exit
PB: predicated region body
PF: predicated region fallthrough
CT: control target
= control target key end

     0   :  { %s1272_s0 = inlined_call_operand.vmem [shape: f32[24,16], index: 0, kind: input, shape index: {}]   ;;  %s1273_s1 = inlined_call_operand.vmem [shape: f32[16,128], index: 1, kind: input, shape index: {}]   ;;  %s1274_s2 = inlined_call_operand.hbm [shape: f32[128,128], index: 2, kind: input, shape index: {}]   ;;  %s1275_s3 = inlined_call_operand.vmem [shape: f32[1,128], index: 3, kind: input, shape index: {}]   ;;  %s1276_s4 = inlined_call_operand.vmem [shape: f32[1,128], index: 4, kind: input, shape index: {}]   ;;  %s1277_s5 = inlined_call_operand.hbm [shape: f32[24,128], index: 5, kind: output, shape index: {}]  }
   0x1   :  { %1278 = sst [smem:[#allocation13_spill]] %s1272_s0 }
   0x2   :  { %1279 = sst [smem:[#allocation14_spill]] %s1273_s1 }
   0x3   :  { %10 = vsyncpa [#allocation8], 0 }
   0x4   :  { %11 = vsyncpa [#allocation9], 0 }
   0x5   :  { %13 = vsyncpa [#allocation9 + $0x1], 0  ;;  %s1092_s18 = smov 0   ;;  %s1094_s19 = smov 0  }
   0x6   :  { %s1096_s20 = smov 0   ;;  %s1098_s21 = smov 0  }
   0x7   :  { %s1100_s22 = smov 0   ;;  %s1102_s23 = smov 0  }
   0x8   :  { %s1104_s24 = smov 0   ;;  %s1106_s25 = smov 0  }
   0x9 LB: > { %s738_s26 = sadd.s32 4294967295, %s1050_s25   ;;  %s739_s27 = sadd.s32 4294967294, %s1050_s25   ;;  %s1050_s25 = sphi %s1106_s25, %s19_s25   ;;  %s1046_s24 = sphi %s1104_s24, %s1293_s24   ;;  %s1042_s23 = sphi %s1102_s23, %s1292_s23   ;;  %s1038_s22 = sphi %s1100_s22, %s1291_s22   ;;  %s1034_s21 = sphi %s1098_s21, %s1290_s21   ;;  %s1030_s20 = sphi %s1096_s20, %s1289_s20   ;;  %s1026_s19 = sphi %s1094_s19, %s1288_s19   ;;  %s1022_s18 = sphi %s1092_s18, %s1287_s18  }
   0xa   : > { %s28_s28 = sadd.s32 1, %s1042_s23  ;;  %s31_s29 = sadd.s32 1, %s1046_s24 }
   0xb   : > { %p29_p0 = scmp.ge.s32.totalorder %s28_s28, 3  ;;  %s149_s30 = smul.u32 %s1042_s23, %s1046_s24 }
   0xc   : > { %s154_s6 = sadd.s32 1, %s1030_s20  ;;  %p164_p1 = scmp.ne.s32.totalorder %s1030_s20, %s1026_s19 }
   0xd   : > { %s1295_s28 = smov (%p29_p0, %s28_s28), 0  ;;  %s1297_s29 = smov (!%p29_p0, %s31_s29), %s1046_s24 }
   0xe   : > { %p165_p2 = scmp.eq.s32.totalorder %s738_s26, 5  ;;  %p170_p3 = scmp.ne.s32.totalorder %s1026_s19, %s1022_s18 }
   0xf   : > { %p33_p4 = scmp.ge.s32.totalorder %s1297_s29, 2  ;;  %p171_p5 = scmp.eq.s32.totalorder %s739_s27, 5 }
  0x10   : > { %p1146_p6 = por %p165_p2, %p164_p1  ;;  %p740_p7 = scmp.ge.s32.totalorder %s1050_s25, 1 }
  0x11   : > { %s1299_s29 = smov (%p33_p4, %s1297_s29), 0  ;;  %p1153_p8 = por %p171_p5, %p170_p3 }
  0x12   : > { %p178_p9 = scmp.lt.s32.totalorder %s1050_s25, 7  ;;  %s150_s9 = smul.u32 %s1299_s29, %s1295_s28 }
  0x13   : > { %s1281_s8 = scalar_select %p1153_p8, 1, 0 }
  0x14   : > { %p1160_p10 = pnand %p740_p7, %p178_p9  ;;  %p1164_p11 = scmp.eq.s32.totalorder %s738_s26, 0 }
  0x15   : > { %s151_s12 = ssub.s32 %s149_s30, %s150_s9  ;;  %s1052_s13 = smov [#allocation7]  }
  0x16   : > { %p152_p12 = scmp.eq.s32.totalorder %s151_s12, 0  ;;  %p842_p13 = pneg %p1160_p10 }
  0x17   : > { %s193_s14 = sshll.u32 %s1052_s13, 4  ;;  %s194_s14 = int_to_ptr.vmem [resolvable:$true] %s193_s14 }
  0x18   : > { %s1171_s15 = scalar_select %p152_p12, %s1030_s20, %s154_s6  }
  0x19   : > { %p843_p0 = pnand %p1164_p11, %p842_p13  ;;  %s939_s16 = scalar_lea.vmem %s194_s14, 2048 }
  0x1a   : > { %p940_p2 = scmp.ne.s32.totalorder %s194_s14, %s939_s16  ;;  %p947_p5 = scmp.lt.s32.totalorder %s194_s14, %s194_s14 }
  0x1b   : > { %p930_p1 = pneg %p843_p0  ;;  %p948_p7 = scmp.lt.s32.totalorder %s939_s16, %s939_s16 }
  0x1d   : > { %p942_p3 = pnand %p940_p2, %p930_p1  ;;  %p949_p9 = por %p948_p7, %p947_p5 }
  0x1f   : > { %p943_p4 = pneg %p942_p3 }
  0x21   : > { %p950_p8 = pnand %p949_p9, %p943_p4 }
  0x23   : > { %953 = shalt.err (!%p950_p8)
}
  0x24   : > { %s1053_s17 = smov 128   ;;  %s1054_s26 = smov 8  }
  0x25   : > { %845 = dma.hbm_to_vmem [thread:$0]  (!%p843_p0), %s1274_s2, 2048, %s194_s14, [#allocation8], %s1053_s17, %s1053_s17, %s1054_s26  }
  0x26   : > { %226 = sbr.rel (%p1160_p10) target bundleno = 763 (0x2fb), region = 40 }
  0x2b   : > { %1013 = dma.done.wait (%p1164_p11), [#allocation8], 2048  }
  0x2c   : > { %1015 = vsyncadd (%p1164_p11), [#allocation8], 4294965248  ;;  %s252_s6 = sand.u32 1, %s1026_s19   ;;  %s255_s9 = ssub.s32 1, %s1038_s22 }
  0x2d   : > { %s1188_s12 = sshll.u32 %s252_s6, 3  ;;  %s256_s10 = smul.u32 %s1034_s21, %s255_s9 }
  0x2e   : > { %p264_p8 = scmp.eq.s32.totalorder %s1038_s22, 0  ;;  %p265_p12 = scmp.eq.s32.totalorder %s1034_s21, 0 }
  0x2f   : > { %p257_p10 = scmp.lt.s32.totalorder %s256_s10, 2  ;;  %s1284_s0 = sld [smem:[#allocation13_spill]] }
  0x30   : > { %p266_p11 = pnand %p265_p12, %p264_p8  ;;  %s254_s17 = scalar_lea.vmem [#allocation10], %s1188_s12 }
  0x31   : > { %s1301_s10 = smov (!%p257_p10, %s256_s10), 2 }
  0x32   : > { %s746_s11 = sshll.u32 %s1301_s10, 3  ;;  %269 = sbr.rel (%p266_p11) target bundleno = 57 (0x39), region = 48 }
  0x35   : > { %s260_s16 = scalar_lea.vmem %s1284_s0, %s746_s11 }
  0x37   : > { %v1055_v0 = vmov 0.0  }
  0x38   : > { %270 = vst [vmem:[#allocation3] sm:$0xff] %v1055_v0  ;;  %271 = vst [vmem:[#allocation4] sm:$0xff] %v1055_v0 }
  0x39 PF: > { %p747_p13 = scmp.ne.s32.totalorder %s1038_s22, 0 }
  0x3a   : > { %s1285_s1 = sld [smem:[#allocation14_spill]] (!%p747_p13)  ;;  %s749_s10 = sshll.u32 (!%p747_p13), %s1034_s21, 3 }
  0x3b   : > { %274 = sbr.rel (%p747_p13) target bundleno = 463 (0x1cf), region = 52  ;;  %s353_s11 = scalar_lea.vmem (!%p747_p13), [#allocation2], %s749_s10 }
  0x40   : > { %v277_v1 = vld [vmem:[%s1285_s1 + $0x8] sm:$0xff]  ;;  %v1056_v2 = vmov 0.0   ;;  %v276_v3 = vld [vmem:[%s1285_s1] sm:$0xff]  ;;  %vm1057_vm0 = vmmov 0   ;;  %vm278_vm1 = vcmask 130048   ;;  %vm356_vm2 = vcmask 64512  }
  0x41   : > { %784 = vmatprep.subr.mxu0 %v1056_v2  ;;  %788 = vmatprep.mubr.msk.f32.mxu0 %vm1057_vm0, %v1056_v2  ;;  %v275_v4 = vld [vmem:[%s260_s16] sm:$0xff]  ;;  %v1058_v8 = vmov 1.0   ;;  %v355_v9 = vld [vmem:[#allocation3] sm:$0xff] }
  0x42   : > { %785 = vmatpush3.msra.mxu0 %v277_v1  ;;  %791 = vmatprep.subr.mxu1 %v1056_v2  ;;  %v432_v13 = vld [vmem:[#allocation4] sm:$0xff] }
  0x43   : > { %786 = vmatprep.subr.mxu0 %v1056_v2  ;;  %793 = vmatprep.mubr.msk.f32.mxu1 %vm1057_vm0, %v1056_v2 }
  0x44   : > { %787 = vmatpush3.msra.mxu0 %v276_v3 }
  0x45   : > { %789 = vmatmul.mubr.msk.f32.vlgmr.msra.gmra.mxu0 %vm278_vm1, %v275_v4 }
 0x105   : > { %v348_v5 = vpop.f32.mrf.mxu0 }
 0x106   : > { %354 = vst [vmem:[%s353_s11] sm:$0xff] %v348_v5  ;;  %v433_v6 = vmul.f32 %v348_v5, %v348_v5  ;;  %792 = vmatpush3.msra.mxu1 %v348_v5 }
 0x107   : > { %v790_v7 = vpop.f32.mrf.mxu0  ;;  %794 = vmatmul.mubr.msk.f32.vlgmr.msra.gmra.mxu1 %vm356_vm2, %v1058_v8  ;;  %796 = vmatprep.subr.mxu1 %v1056_v2 }
 0x108   : > { %797 = vmatpush3.msra.mxu1 %v433_v6  ;;  %798 = vmatprep.mubr.msk.f32.mxu1 %vm1057_vm0, %v1056_v2 }
 0x10b   : > { %799 = vmatmul.mubr.msk.f32.vlgmr.msra.gmra.mxu1 %vm356_vm2, %v1058_v8 }
 0x1c7   : > { %v426_v10 = vpop.f32.mrf.mxu1 }
 0x1c8   : > { %v430_v11 = vadd.f32 %v426_v10, %v355_v9 }
 0x1c9   : > { %v795_v12 = vpop.f32.mrf.mxu1 }
 0x1ca   : > { %431 = vst [vmem:[#allocation3] sm:$0xff] %v430_v11 }
 0x1cb   : > { %v500_v14 = vpop.f32.mrf.mxu1 }
 0x1cc   : > { %v504_v15 = vadd.f32 %v500_v14, %v432_v13 }
 0x1cd   : > { %v800_v16 = vpop.f32.mrf.mxu1 }
 0x1ce   : > { %505 = vst [vmem:[#allocation4] sm:$0xff] %v504_v15 }
 0x1cf PF: > { %p506_p0 = scmp.eq.s32.totalorder %s1038_s22, 1 }
 0x1d1   : > { %p507_p1 = pnand %p506_p0, %p265_p12 }
 0x1d3   : > { %510 = sbr.rel (%p507_p1) target bundleno = 504 (0x1f8), region = 56 }
 0x1d8   : > { %v511_v17 = vld [vmem:[#allocation3] sm:$0x1]  ;;  %v513_v18 = vld [vmem:[#allocation4] sm:$0x1] }
 0x1d9   : > { %v512_v19 = vmul.f32 0.04761905, %v511_v17  ;;  %v514_v20 = vmul.f32 0.04761905, %v513_v18  ;;  %v518_v25 = vld [vmem:[%s1275_s3] sm:$0x1] }
 0x1da   : > { %v523_v28 = vld [vmem:[%s1276_s4] sm:$0x1] }
 0x1db   : > { %v515_v21 = vmul.f32 %v512_v19, %v512_v19 }
 0x1dd   : > { %v516_v22 = vsub.f32 %v514_v20, %v515_v21 }
 0x1df   : > { %v517_v23 = vmax.f32 %v516_v22, 0.0 }
 0x1e1   : > { %v519_v24 = vadd.f32 1e-05, %v517_v23 }
 0x1e3   : > { %926 = vrsqrt.f32 %v519_v24 }
 0x1f0   : > { %v927_v26 = vpop.eup %926 }
 0x1f1   : > { %v521_v27 = vmul.f32 %v927_v26, %v518_v25 }
 0x1f3   : > { %522 = vst [vmem:[#allocation5] sm:$0x1] %v521_v27  ;;  %v524_v29 = vmul.f32 %v521_v27, %v512_v19 }
 0x1f5   : > { %v525_v30 = vsub.f32 %v523_v28, %v524_v29 }
 0x1f7   : > { %526 = vst [vmem:[#allocation6] sm:$0x1] %v525_v30 }
 0x1f8 PF: > { %p752_p2 = scmp.ne.s32.totalorder %s1038_s22, 1 }
 0x1f9   : > { %s753_s27 = sshll.u32 (!%p752_p2), %s1034_s21, 3 }
 0x1fa   : > { %529 = sbr.rel (%p752_p2) target bundleno = 739 (0x2e3), region = 60  ;;  %s531_s30 = scalar_lea.vmem (!%p752_p2), [#allocation2], %s753_s27 }
 0x1ff   : > { %v565_v31 = vld [vmem:[#allocation7 + $0x78] sm:$0xff]  ;;  %v1059_v32 = vmov 0.0   ;;  %v564_v33 = vld [vmem:[#allocation7 + $0x70] sm:$0xff]  ;;  %vm1060_vm3 = vmmov 0   ;;  %v563_v34 = vld [vmem:[#allocation7 + $0x68] sm:$0xff] }
 0x200   : > { %801 = vmatprep.subr.mxu0 %v1059_v32  ;;  %833 = vmatprep.mubr.msk.f32.mxu0 %vm1060_vm3, %v1059_v32  ;;  %v562_v35 = vld [vmem:[#allocation7 + $0x60] sm:$0xff]  ;;  %v561_v36 = vld [vmem:[#allocation7 + $0x58] sm:$0xff]  ;;  %v560_v37 = vld [vmem:[#allocation7 + $0x50] sm:$0xff] }
 0x201   : > { %802 = vmatpush3.msra.mxu0 %v565_v31  ;;  %v559_v38 = vld [vmem:[#allocation7 + $0x48] sm:$0xff]  ;;  %v558_v39 = vld [vmem:[#allocation7 + $0x40] sm:$0xff]  ;;  %v557_v40 = vld [vmem:[#allocation7 + $0x38] sm:$0xff] }
 0x202   : > { %803 = vmatprep.subr.mxu0 %v1059_v32  ;;  %v556_v41 = vld [vmem:[#allocation7 + $0x30] sm:$0xff]  ;;  %v754_v43 = vld [vmem:[#allocation5] ss:$0 sm:$0xff]  ;;  %v555_v44 = vld [vmem:[#allocation7 + $0x28] sm:$0xff] }
 0x203   : > { %804 = vmatpush3.msra.mxu0 %v564_v33  ;;  %v532_v42 = vld [vmem:[%s531_s30] sm:$0xff]  ;;  %v554_v45 = vld [vmem:[#allocation7 + $0x20] sm:$0xff]  ;;  %v755_v47 = vld [vmem:[#allocation6] ss:$0 sm:$0xff] }
 0x204   : > { %805 = vmatprep.subr.mxu0 %v1059_v32  ;;  %v540_v46 = vmul.f32 %v754_v43, %v532_v42  ;;  %v553_v48 = vld [vmem:[#allocation7 + $0x18] sm:$0xff]  ;;  %v552_v49 = vld [vmem:[#allocation7 + $0x10] sm:$0xff]  ;;  %v551_v51 = vld [vmem:[#allocation7 + $0x8] sm:$0xff] }
 0x205   : > { %806 = vmatpush3.msra.mxu0 %v563_v34  ;;  %v550_v52 = vld [vmem:[#allocation7] sm:$0xff] }
 0x206   : > { %807 = vmatprep.subr.mxu0 %v1059_v32  ;;  %v548_v50 = vadd.f32 %v755_v47, %v540_v46 }
 0x207   : > { %808 = vmatpush3.msra.mxu0 %v562_v35 }
 0x208   : > { %809 = vmatprep.subr.mxu0 %v1059_v32  ;;  %v549_v53 = vmax.f32 %v548_v50, 0.0 }
 0x209   : > { %810 = vmatpush3.msra.mxu0 %v561_v36 }
 0x20a   : > { %811 = vmatprep.subr.mxu0 %v1059_v32 }
 0x20b   : > { %812 = vmatpush3.msra.mxu0 %v560_v37 }
 0x20c   : > { %813 = vmatprep.subr.mxu0 %v1059_v32 }
 0x20d   : > { %814 = vmatpush3.msra.mxu0 %v559_v38 }
 0x20e   : > { %815 = vmatprep.subr.mxu0 %v1059_v32 }
 0x20f   : > { %816 = vmatpush3.msra.mxu0 %v558_v39 }
 0x210   : > { %817 = vmatprep.subr.mxu0 %v1059_v32 }
 0x211   : > { %818 = vmatpush3.msra.mxu0 %v557_v40 }
 0x212   : > { %819 = vmatprep.subr.mxu0 %v1059_v32 }
 0x213   : > { %820 = vmatpush3.msra.mxu0 %v556_v41 }
 0x214   : > { %821 = vmatprep.subr.mxu0 %v1059_v32 }
 0x215   : > { %822 = vmatpush3.msra.mxu0 %v555_v44 }
 0x216   : > { %823 = vmatprep.subr.mxu0 %v1059_v32 }
 0x217   : > { %824 = vmatpush3.msra.mxu0 %v554_v45 }
 0x218   : > { %825 = vmatprep.subr.mxu0 %v1059_v32 }
 0x219   : > { %826 = vmatpush3.msra.mxu0 %v553_v48 }
 0x21a   : > { %827 = vmatprep.subr.mxu0 %v1059_v32 }
 0x21b   : > { %828 = vmatpush3.msra.mxu0 %v552_v49 }
 0x21c   : > { %829 = vmatprep.subr.mxu0 %v1059_v32 }
 0x21d   : > { %830 = vmatpush3.msra.mxu0 %v551_v51 }
 0x21e   : > { %831 = vmatprep.subr.mxu0 %v1059_v32 }
 0x21f   : > { %832 = vmatpush3.msra.mxu0 %v550_v52 }
 0x220   : > { %834 = vmatmul.mubr.f32.vlgmr.msra.gmra.mxu0 %v549_v53 }
 0x2e0   : > { %v632_v54 = vpop.f32.mrf.mxu0 }
 0x2e1   : > { %636 = vst [vmem:[%s254_s17] sm:$0xff] %v632_v54 }
 0x2e2   : > { %v835_v55 = vpop.f32.mrf.mxu0 }
 0x2e3 PF: > { %s645_s9 = smul.u32 %s1034_s21, %s1038_s22  ;;  %s652_s10 = sshll.u32 %s254_s17, 4  ;;  %s653_s10 = int_to_ptr.vmem [resolvable:$true] %s652_s10 }
 0x2e4   : > { %s638_s26 = scalar_lea.sflag [#allocation9], %s252_s6  ;;  %s954_s27 = scalar_lea.vmem %s653_s10, 128 }
 0x2e5   : > { %s757_s11 = sshll.u32 %s645_s9, 7  ;;  %p955_p3 = scmp.ne.s32.totalorder %s653_s10, %s954_s27 }
 0x2e6   : > { %s650_s16 = scalar_lea.hbm %s1277_s5, %s757_s11  ;;  %s1061_s30 = smov [#allocation10]  }
 0x2e7   : > { %p956_p4 = pnand %p955_p3, %p1146_p6  ;;  %s958_s0 = sshll.u32 %s1061_s30, 4  ;;  %s959_s0 = int_to_ptr.vmem [resolvable:$false] %s958_s0 }
 0x2e8   : > { %s960_s1 = scalar_lea.vmem %s959_s0, 256  ;;  %p961_p7 = scmp.lt.s32.totalorder %s653_s10, %s959_s0 }
 0x2e9   : > { %p957_p5 = pneg %p956_p4  ;;  %p962_p9 = scmp.lt.s32.totalorder %s960_s1, %s954_s27 }
 0x2eb   : > { %p963_p8 = por %p962_p9, %p961_p7 }
 0x2ed   : > { %p964_p10 = pnand %p963_p8, %p957_p5 }
 0x2ef   : > { %967 = shalt.err (!%p964_p10)
}
 0x2f0   : > { %s968_s21 = scalar_lea.hbm %s650_s16, 128  ;;  %s972_s12 = scalar_lea.hbm %s1277_s5, 384 }
 0x2f1   : > { %p969_p12 = scmp.ne.s32.totalorder %s650_s16, %s968_s21  ;;  %p973_p0 = scmp.lt.s32.totalorder %s650_s16, %s1277_s5 }
 0x2f2   : > { %p974_p1 = scmp.lt.s32.totalorder %s972_s12, %s968_s21 }
 0x2f3   : > { %p970_p11 = pnand %p969_p12, %p1146_p6 }
 0x2f4   : > { %p975_p2 = por %p974_p1, %p973_p0 }
 0x2f5   : > { %p971_p13 = pneg %p970_p11 }
 0x2f7   : > { %p976_p3 = pnand %p975_p2, %p971_p13 }
 0x2f9   : > { %979 = shalt.err (!%p976_p3)
}
 0x2fa   : > { %840 = dma.vmem_to_hbm [thread:$0]  (%p1146_p6), %s653_s10, 128, %s650_s16, %s638_s26  }
 0x2fb PF: > { %p852_p4 = scmp.ge.s32.totalorder %s1050_s25, 2  ;;  %s664_s0 = sand.u32 1, %s1022_s18  }
 0x2fc   : > { %p1286_p5 = scmp.ne.s32.totalorder %s1281_s8, 0  ;;  %s665_s1 = scalar_lea.sflag [#allocation9], %s664_s0 }
 0x2fe   : > { %p847_p7 = pnand %p852_p4, %p1286_p5 }
 0x300   : > { %p848_p9 = pneg %p847_p7 }
 0x302   : > { %1017 = dma.done.wait (%p848_p9), %s665_s1, 128  }
 0x303   : > { %1019 = vsyncadd (%p848_p9), %s665_s1, 4294967168  ;;  %s19_s25 = sadd.s32 1, %s1050_s25   ;;  %s1287_s18 = smov %s1026_s19 }
 0x304   : > { %p16_p8 = scmp.ge.s32.totalorder %s19_s25, 8   ;;  %s1288_s19 = smov %s1030_s20 }
 0x305   : > { %s1289_s20 = smov %s1171_s15  ;;  %s1290_s21 = smov %s1042_s23 }
 0x306   : > { %s1291_s22 = smov %s1046_s24  ;;  %s1292_s23 = smov %s1295_s28 }
 0x307   : > { %s1293_s24 = smov %s1299_s29  ;;  %18 = sbr.rel (!%p16_p8) target bundleno = 9 (0x9), region = 98 }
 0x30c   :  { %670 = vsyncpa [#allocation8], 1 }
 0x30d   :  { %672 = vsyncpa [#allocation8 + $0x1], 1 }
 0x30e   :  { %673 = vsyncpa [#allocation9], 1 }
 0x30f   :  { %675 = vsyncpa [#allocation9 + $0x1], 1 }

</bundles_post_ra>
